<compile_context>
chip_gen: v7x
topology: tpu7x:2x2x1
jax: 0.10.0
libtpu: 0.0.40
codegen_flags: <defaults>
</compile_context>

<pallas_src>
import functools

import jax
import jax.numpy as jnp
from jax.experimental import pallas as pl
from jax.experimental.pallas import tpu as pltpu


def _nested_dropout_kernel(cut_ref, x_ref, out_ref, noise_ref=None):
    """cut_ref: (BR, 1) int32 per-block cutoffs.
       x_ref/out_ref: (BR, D) in x.dtype; noise_ref (optional): (BR, D) int8."""
    cut = cut_ref[...]                                                    # (BR, 1) int32
    col = jax.lax.broadcasted_iota(jnp.int32, (1, x_ref.shape[1]), 1)     # (1, D)
    keep = col < cut                                                      # (BR, D) bool
    out_ref[...] = jnp.where(keep, x_ref[...], 0)
    if noise_ref is not None:
        noise_ref[...] = keep.astype(jnp.int8)


def _choose_block_rows(n_rows, d, x_itemsize, with_noise):
    """Pick a row-tile size from a per-step HBM-byte target, clamped by a VMEM budget."""
    bytes_per_row = d * (2 * x_itemsize + (1 if with_noise else 0))   # x + out (+ noise)
    vmem_bytes_per_row = bytes_per_row + 512      # + lane-padded (br,1) int32 cutoff tile
    target_bytes = 6 * 1024 * 1024                # ~6 MiB combined HBM traffic per step
    vmem_budget = 36 * 1024 * 1024                # 2x-buffered tiles, under 48 MiB limit
    cap = max(8, vmem_budget // (2 * vmem_bytes_per_row))
    br = max(8, min(cap, target_bytes // bytes_per_row))
    # Keep >= 4 grid steps when the batch allows it (>= 2 per TensorCore on v7x megacore)
    # so each core keeps input DMA / output writeback double-buffered; >= 2 steps for
    # moderate batches.  Near-neutral on single-TC v5e/v6e.
    if n_rows >= 4 * 32:
        br = min(br, n_rows // 4)
    elif n_rows >= 64:
        br = min(br, n_rows // 2)
    br = min(br, n_rows)
    # Sublane-dense rounding (f32/bf16/int8 row tiles all pack cleanly at 32).
    if br >= 32:
        br -= br % 32
    elif br < n_rows:
        br = max(8, br - br % 8)
    # else: br == n_rows < 32 -> full-extent block, always legal.
    return max(br, 1)


@functools.partial(jax.jit, static_argnames=("n_converged", "p", "return_noise"))
def nested_dropout(x, key, *, n_converged=0, p=0.02, return_noise=True):
    """Forward pass of NestedDropoutLayer.

    Returns (output, noise, cutoff) if return_noise else (output, cutoff):
      output  : x * noise, same dtype as x
      noise   : int8 keep-mask (noise.astype(bool) == module.get_noise())
      cutoff  : (N, 1) int32 per-row cut index -- the mask (and the backward pass
                grad_input = grad_output * noise) is fully determined by it.
    """
    n_rows, d = x.shape

    # --- Geometric(p) sampling (number of failures before first success), in JAX ---
    tiny = jnp.finfo(jnp.float32).tiny
    u = jax.random.uniform(key, (n_rows,), minval=tiny, maxval=1.0)
    b = jnp.floor(jnp.log(u) / jnp.log1p(-p)).astype(jnp.int32)
    cutoff = (jnp.int32(n_converged) + b + 1).reshape(n_rows, 1)
    # Note: cutoff may exceed d; the mask simply saturates to all-ones (no OOB indexing).

    br = _choose_block_rows(n_rows, d, x.dtype.itemsize, return_noise)
    num_blocks = pl.cdiv(n_rows, br)

    slab_spec = pl.BlockSpec((br, d), lambda i: (i, 0))
    out_shape = jax.ShapeDtypeStruct((n_rows, d), x.dtype)
    if return_noise:
        out_shape = (out_shape, jax.ShapeDtypeStruct((n_rows, d), jnp.int8))
        out_specs = [slab_spec, slab_spec]
    else:
        out_specs = slab_spec

    bytes_accessed = n_rows * d * (2 * x.dtype.itemsize + (1 if return_noise else 0)) \
        + n_rows * 4

    result = pl.pallas_call(
        _nested_dropout_kernel,
        out_shape=out_shape,
        grid_spec=pltpu.PrefetchScalarGridSpec(
            num_scalar_prefetch=0,
            grid=(num_blocks,),
            in_specs=[
                # Per-block cutoff slice: a few KiB DMA hidden under the slab DMA.
                pl.BlockSpec((br, 1), lambda i: (i, 0)),
                # Large lane-dense row slabs of the input (full D kept in the last dim).
                slab_spec,
            ],
            out_specs=out_specs,
        ),
        compiler_params=pltpu.CompilerParams(
            dimension_semantics=("parallel",),
            vmem_limit_bytes=48 * 1024 * 1024,
        ),
        cost_estimate=pl.CostEstimate(
            flops=2 * n_rows * d, transcendentals=0, bytes_accessed=bytes_accessed),
    )(cutoff, x)

    # TODO(synk): backward (grad_input = grad_output * noise) can reuse this same kernel
    # with grad_output as input (return_noise=False); not part of the forward spec.
    if return_noise:
        out, noise = result
        return out, noise, cutoff
    return result, cutoff


if __name__ == "__main__":
    key = jax.random.PRNGKey(0)
    k_x, k_noise = jax.random.split(key)

    # Small shapes consistent with the module: (batch, k_dim)
    N, k_dim = 16, 128
    x = jax.random.normal(k_x, (N, k_dim), dtype=jnp.float32)

    n_converged = 3
    p = 0.02

    out, noise, cutoff = nested_dropout(x, k_noise, n_converged=n_converged, p=p)
    jax.block_until_ready((out, noise, cutoff))

    # Reference check in plain JAX (same cutoffs, same semantics as the PyTorch module).
    col = jnp.arange(k_dim, dtype=jnp.int32)[None, :]
    ref_noise = col < cutoff
    ref_out = x * ref_noise.astype(x.dtype)
    assert jnp.array_equal(noise.astype(bool), ref_noise), "noise mismatch"
    assert jnp.allclose(out, ref_out), "output mismatch"

    # Also exercise the noise-less fast path (backward-style use).
    out2, cut2 = nested_dropout(x, k_noise, n_converged=n_converged, p=p,
                                return_noise=False)
    jax.block_until_ready((out2, cut2))
    assert jnp.allclose(out2, ref_out), "output (no-noise path) mismatch"

    print("KERNEL_OK")
</pallas_src>

<mosaic_0001>
module attributes {stable_mosaic.version = 11 : i64} {
  func.func @_nested_dropout_kernel(%arg0: i32, %arg1: memref<16x1xi32, #tpu.memory_space<vmem>>, %arg2: memref<16x128xf32, #tpu.memory_space<vmem>>, %arg3: memref<16x128xf32, #tpu.memory_space<vmem>>, %arg4: memref<16x128xi8, #tpu.memory_space<vmem>>) attributes {dimension_semantics = [#tpu.dimension_semantics<parallel>], iteration_bounds = array<i64: 1>, scalar_prefetch = 0 : i64, scratch_operands = 0 : i64, tpu.core_type = #tpu.core_type<tc>, window_params = [{transform_indices = @transform_0, window_bounds = array<i64: 16, 1>}, {transform_indices = @transform_1, window_bounds = array<i64: 16, 128>}, {transform_indices = @transform_2, window_bounds = array<i64: 16, 128>}, {transform_indices = @transform_3, window_bounds = array<i64: 16, 128>}]} {
    %c0 = arith.constant 0 : index
    %c0_0 = arith.constant 0 : index
    %0 = vector.load %arg1[%c0, %c0_0] : memref<16x1xi32, #tpu.memory_space<vmem>>, vector<16x1xi32>
    %1 = tpu.iota {dimensions = array<i32: 1>} : vector<1x128xi32>
    %2 = vector.broadcast %1 : vector<1x128xi32> to vector<16x128xi32>
    %3 = vector.broadcast %0 : vector<16x1xi32> to vector<16x128xi32>
    %4 = arith.cmpi slt, %2, %3 : vector<16x128xi32>
    %c0_1 = arith.constant 0 : index
    %c0_2 = arith.constant 0 : index
    %5 = vector.load %arg2[%c0_1, %c0_2] : memref<16x128xf32, #tpu.memory_space<vmem>>, vector<16x128xf32>
    %c0_i32 = arith.constant 0 : i32
    %6 = arith.sitofp %c0_i32 : i32 to f32
    %7 = vector.broadcast %6 : f32 to vector<16x128xf32>
    %8 = arith.select %4, %5, %7 : vector<16x128xi1>, vector<16x128xf32>
    %c0_3 = arith.constant 0 : index
    %c0_4 = arith.constant 0 : index
    %9 = vector.load %arg3[%c0_3, %c0_4] : memref<16x128xf32, #tpu.memory_space<vmem>>, vector<16x128xf32>
    tpu.vector_store %arg3[%c0_3, %c0_4], %8 {strides = array<i32>} : memref<16x128xf32, #tpu.memory_space<vmem>>, vector<16x128xf32>,
    %10 = arith.extui %4 : vector<16x128xi1> to vector<16x128xi8>
    %c0_5 = arith.constant 0 : index
    %c0_6 = arith.constant 0 : index
    %11 = vector.load %arg4[%c0_5, %c0_6] : memref<16x128xi8, #tpu.memory_space<vmem>>, vector<16x128xi8>
    tpu.vector_store %arg4[%c0_5, %c0_6], %10 {strides = array<i32>} : memref<16x128xi8, #tpu.memory_space<vmem>>, vector<16x128xi8>,
    return
  }
  func.func @transform_0(%arg0: i32) -> (i32, i32) {
    %c0_i32 = arith.constant 0 : i32
    %c0_i32_0 = arith.constant 0 : i32
    return %arg0, %c0_i32 : i32, i32
  }
  func.func @transform_1(%arg0: i32) -> (i32, i32) {
    %c0_i32 = arith.constant 0 : i32
    %c0_i32_0 = arith.constant 0 : i32
    return %arg0, %c0_i32 : i32, i32
  }
  func.func @transform_2(%arg0: i32) -> (i32, i32) {
    %c0_i32 = arith.constant 0 : i32
    %c0_i32_0 = arith.constant 0 : i32
    return %arg0, %c0_i32 : i32, i32
  }
  func.func @transform_3(%arg0: i32) -> (i32, i32) {
    %c0_i32 = arith.constant 0 : i32
    %c0_i32_0 = arith.constant 0 : i32
    return %arg0, %c0_i32 : i32, i32
  }
}

</mosaic_0001>

<bundles_post_ra>
// kernel: nested_dropout.1
= control target key start
LH: loop header
LB: loop body
LE: loop exit
PB: predicated region body
PF: predicated region fallthrough
CT: control target
= control target key end

     0   :  { %9 = vsyncpa [#allocation3], 0  ;;  %v134_v1 = vmov 0   ;;  %s197_s0 = inlined_call_operand.vmem [shape: s32[16,1], index: 0, kind: input, shape index: {}]   ;;  %s198_s1 = inlined_call_operand.vmem [shape: f32[16,128], index: 1, kind: input, shape index: {}]   ;;  %s199_s2 = inlined_call_operand.hbm [shape: f32[16,128], index: 2, kind: output, shape index: {0}]   ;;  %s200_s3 = inlined_call_operand.hbm [shape: s8[16,128], index: 3, kind: output, shape index: {1}]  }
   0x1   :  { %v17_v0 = vld [vmem:[%s197_s0] sm:$0xff]  ;;  %85 = vset.pattern.permute.xlu0 %v134_v1 }
   0x2   :  { %10 = vsyncpa [#allocation5], 0  ;;  %22 = vperm.xlu0 %85, %v17_v0   ;;  %v18_v2 = vld [vmem:[%s197_s0 + $0x8] sm:$0xff]  ;;  %v19_v3 = vlaneseq  ;;  %v29_v5 = vld [vmem:[%s198_s1] sm:$0xff]  ;;  %s135_s18 = smov [#allocation2]  }
   0x3   :  { %s51_s19 = sshll.u32 %s135_s18, 4  ;;  %v30_v8 = vld [vmem:[%s198_s1 + $0x8] sm:$0xff]  ;;  %s52_s19 = int_to_ptr.vmem [resolvable:$true] %s51_s19 }
   0x4   :  { %v20_v4 = vand.u32 127, %v19_v3  ;;  %s86_s0 = scalar_lea.vmem %s52_s19, 256  ;;  %p91_p1 = scmp.lt.s32.totalorder %s52_s19, %s52_s19 }
   0x5   :  { %p87_p0 = scmp.ne.s32.totalorder %s52_s19, %s86_s0  ;;  %p92_p2 = scmp.lt.s32.totalorder %s86_s0, %s86_s0 }
   0x6   :  { %25 = vperm.xlu0 %85, %v18_v2  }
   0x7   :  { %p93_p3 = por %p92_p2, %p91_p1 }
   0x9   :  { %p94_p4 = pnand %p93_p3, %p87_p0 }
  0x81   :  { %v23_v6 = vpop.permute.xlu0 %22 }
  0x82   :  { %vm27_vm0 = vcmp.lt.s32.totalorder %v20_v4, %v23_v6 }
  0x83   :  { %v31_v7 = vsel %vm27_vm0, %v29_v5, 0.0 }
  0x84   :  { %33 = vst [vmem:[#allocation2] sm:$0xff] %v31_v7 }
  0x85   :  { %v26_v9 = vpop.permute.xlu0 %25 }
  0x86   :  { %vm28_vm1 = vcmp.lt.s32.totalorder %v20_v4, %v26_v9 }
  0x87   :  { %v32_v10 = vsel %vm28_vm1, %v30_v8, 0.0  ;;  %vm35_vm2 = vmpackc.low %vm28_vm1, %vm27_vm0 }
  0x88   :  { %34 = vst [vmem:[#allocation2 + $0x8] sm:$0xff] %v32_v10  ;;  %vm36_vm3 = vmpackc.even %vm35_vm2, %vm35_vm2 }
  0x89   :  { %v37_v11 = vsel %vm36_vm3, 16843009, %v134_v1 }
  0x8a   :  { %97 = shalt.err (!%p94_p4)
}
  0x8b   :  { %s98_s24 = scalar_lea.hbm %s199_s2, 256 }
  0x8c   :  { %p99_p5 = scmp.ne.s32.totalorder %s199_s2, %s98_s24  ;;  %p102_p6 = scmp.lt.u32.totalorder %s98_s24, %s199_s2 }
  0x8e   :  { %p104_p7 = pnand %p102_p6, %p99_p5 }
  0x90   :  { %107 = shalt.err (!%p104_p7)
}
  0x91   :  { %s136_s28 = smov 128   ;;  %s137_s29 = smov 8   ;;  %v38_v12 = vunpack.c.0.s8 %v37_v11  ;;  %v39_v13 = vunpack.c.1.s8 %v37_v11 }
  0x92   :  { %57 = dma.vmem_to_hbm [thread:$0]  %s52_s19, 256, %s199_s2, [#allocation3], %s136_s28, %s136_s28, %s137_s29  }
  0x93   :  { %s138_s5 = smov [#allocation4]   ;;  %v40_v14 = vpack.c.b16 %v38_v12, %v38_v12  ;;  %v42_v15 = vpack.c.b16 %v39_v13, %v39_v13 }
  0x94   :  { %s63_s6 = sshll.u32 %s138_s5, 4  ;;  %s64_s6 = int_to_ptr.vmem [resolvable:$true] %s63_s6 }
  0x95   :  { %v41_v16 = vpack.c.b8 %v40_v14, %v40_v14  ;;  %v43_v17 = vpack.c.b8 %v42_v15, %v42_v15  ;;  %s108_s7 = scalar_lea.vmem %s64_s6, 64  ;;  %p113_p9 = scmp.lt.s32.totalorder %s64_s6, %s64_s6 }
  0x96   :  { %p109_p8 = scmp.ne.s32.totalorder %s64_s6, %s108_s7  ;;  %p114_p10 = scmp.lt.s32.totalorder %s108_s7, %s108_s7 }
  0x97   :  { %44 = vst [vmem:[#allocation4] sm:$0x3] %v41_v16  ;;  %45 = vst [vmem:[#allocation4 + $0x2] sm:$0x3] %v43_v17 }
  0x98   :  { %p115_p11 = por %p114_p10, %p113_p9 }
  0x9a   :  { %p116_p12 = pnand %p115_p11, %p109_p8 }
  0x9c   :  { %119 = shalt.err (!%p116_p12)
}
  0x9d   :  { %s120_s9 = scalar_lea.hbm %s200_s3, 64 }
  0x9e   :  { %p121_p13 = scmp.ne.s32.totalorder %s200_s3, %s120_s9  ;;  %p124_p0 = scmp.lt.u32.totalorder %s120_s9, %s200_s3 }
  0xa0   :  { %p126_p1 = pnand %p124_p0, %p121_p13 }
  0xa2   :  { %129 = shalt.err (!%p126_p1)
}
  0xa3   :  { %s139_s14 = smov 32   ;;  %s140_s15 = smov 2  }
  0xa4   :  { %69 = dma.vmem_to_hbm [thread:$0]  %s64_s6, 64, %s200_s3, [#allocation5], %s139_s14, %s139_s14, %s140_s15  }
  0xa5   :  { %130 = dma.done.wait [#allocation3], 256  }
  0xa6   :  { %131 = vsyncadd [#allocation3], 4294967040 }
  0xa7   :  { %132 = dma.done.wait [#allocation5], 64  }
  0xa8   :  { %133 = vsyncadd [#allocation5], 4294967232 }
  0xa9   :  { %76 = vsyncpa [#allocation3], 1 }
  0xaa   :  { %77 = vsyncpa [#allocation5], 1 }

</bundles_post_ra>
